<compile_context>
chip_gen: v7x
topology: tpu7x:2x2x1
jax: 0.10.0
libtpu: 0.0.40
codegen_flags: <defaults>
</compile_context>

<pallas_src>
import jax
import jax.numpy as jnp
from jax.experimental import pallas as pl
from jax.experimental.pallas import tpu as pltpu


def _make_se_kernel(hw_true):
    # Divide by the *true* HW so zero-padded lanes do not bias the mean.
    inv_hw = 1.0 / float(hw_true)

    def kernel(x_ref, w1_ref, w2_ref, o_ref):
        # x_ref: (Bb, C, HW_pad)   w1_ref: (C, Cr)   w2_ref: (Cr, C)
        # Squeeze: global average pool over the lane axis, f32 accumulation.
        y = jnp.sum(x_ref[...], axis=-1, dtype=jnp.float32) * inv_hw      # (Bb, C)

        # Excitation: FC1 -> ReLU -> FC2 -> sigmoid (f32 on the MXU, M = Bb).
        h = jnp.dot(y, w1_ref[...].astype(jnp.float32),
                    preferred_element_type=jnp.float32)                   # (Bb, Cr)
        h = jnp.maximum(h, 0.0)
        s = jnp.dot(h, w2_ref[...].astype(jnp.float32),
                    preferred_element_type=jnp.float32)                   # (Bb, C)
        s = jax.nn.sigmoid(s)

        # Scale: stream x_ref -> multiply -> o_ref. No full-tile f32 copy is
        # held live in vregs; the per-channel gate is cast to the I/O dtype
        # and broadcast along the lane axis.
        gate = s.astype(o_ref.dtype)[:, :, None]                          # (Bb, C, 1)
        o_ref[...] = (x_ref[...] * gate).astype(o_ref.dtype)

    return kernel


def se_layer(x, w1_t, w2_t, *, block_b=None):
    """Fused SE layer.

    x:    (B, C, H, W), float32 or bfloat16.
    w1_t: (C, C//r)  = fc1.weight.T
    w2_t: (C//r, C)  = fc2.weight.T
    """
    B, C, H, W = x.shape
    HW = H * W
    Cr = w1_t.shape[1]
    assert w1_t.shape == (C, Cr) and w2_t.shape == (Cr, C)

    # --- make the lane (last) axis dense: pad HW up to a multiple of 128.
    # Zero padding is harmless: the pool divides by the true HW and the padded
    # lanes are sliced off afterwards.
    LANE = 128
    HW_pad = max(LANE, ((HW + LANE - 1) // LANE) * LANE)
    x_flat = x.reshape(B, C, HW)
    if HW_pad != HW:
        x_flat = jnp.pad(x_flat, ((0, 0), (0, 0), (0, HW_pad - HW)))

    # --- pick the batch block Bb: amortize per-step overhead and enlarge DMAs,
    # while keeping 2 pipelined buffers x (input tile + output tile) well under
    # a VMEM budget that is safe on v7x (64 MiB physical, 32 MiB default scoped
    # limit), and keeping >= 2 grid steps so both v7x TensorCores get work.
    itemsize = jnp.dtype(x.dtype).itemsize
    tile_bytes = C * HW_pad * itemsize                 # one sample's (C, HW_pad) slab
    vmem_budget = 24 * 1024 * 1024
    if block_b is None:
        block_b = max(1, min(B, vmem_budget // (4 * tile_bytes), 512))
        if B >= 2:
            block_b = min(block_b, -(-B // 2))         # ceil(B/2): >= 2 grid steps
    block_b = max(1, min(block_b, B))

    # Pad batch so block_b divides it; padded (zero) rows are discarded below.
    B_pad = -(-B // block_b) * block_b
    if B_pad != B:
        x_flat = jnp.pad(x_flat, ((0, B_pad - B), (0, 0), (0, 0)))
    num_blocks = B_pad // block_b

    kernel = _make_se_kernel(HW)

    w_bytes = (w1_t.size + w2_t.size) * jnp.dtype(w1_t.dtype).itemsize
    vmem_needed = 4 * block_b * tile_bytes + 2 * w_bytes
    compiler_params = pltpu.CompilerParams(
        dimension_semantics=("parallel",),
        vmem_limit_bytes=int(min(max(vmem_needed + (4 << 20), 16 << 20), 32 << 20)),
    )

    # Advisory cost hint: this op is pure HBM roofline (read x, write x*gate).
    cost = pl.CostEstimate(
        flops=int(2 * B * C * HW + 4 * B * C * Cr),
        transcendentals=int(B * C),
        bytes_accessed=int(2 * x_flat.size * itemsize + w_bytes),
    )

    out_flat = pl.pallas_call(
        kernel,
        out_shape=jax.ShapeDtypeStruct((B_pad, C, HW_pad), x.dtype),
        grid_spec=pltpu.PrefetchScalarGridSpec(
            num_scalar_prefetch=0,
            grid=(num_blocks,),
            in_specs=[
                pl.BlockSpec((block_b, C, HW_pad), lambda b: (b, 0, 0)),
                pl.BlockSpec((C, Cr), lambda b: (0, 0)),   # resident across grid
                pl.BlockSpec((Cr, C), lambda b: (0, 0)),   # resident across grid
            ],
            out_specs=pl.BlockSpec((block_b, C, HW_pad), lambda b: (b, 0, 0)),
        ),
        compiler_params=compiler_params,
        cost_estimate=cost,
    )(x_flat, w1_t, w2_t)

    return out_flat[:B, :, :HW].reshape(B, C, H, W)


def se_layer_ref(x, w1_t, w2_t):
    """Pure-JAX reference mirroring the PyTorch module (f32 math)."""
    xf = x.astype(jnp.float32)
    y = jnp.mean(xf, axis=(2, 3))                                # avg pool to 1x1
    y = jnp.maximum(y @ w1_t.astype(jnp.float32), 0.0)           # Linear + ReLU
    y = jax.nn.sigmoid(y @ w2_t.astype(jnp.float32))             # Linear + Sigmoid
    return (xf * y[:, :, None, None]).astype(x.dtype)


if __name__ == "__main__":
    key = jax.random.PRNGKey(0)
    kx, k1, k2 = jax.random.split(key, 3)

    # SELayer(channel=64, reduction=16) -> hidden = 4
    C, reduction = 64, 16
    Cr = C // reduction

    # PyTorch nn.Linear weight is (out, in); the kernel takes the transpose.
    w1 = jax.random.normal(k1, (Cr, C), dtype=jnp.float32) * 0.1   # fc1 weight
    w2 = jax.random.normal(k2, (C, Cr), dtype=jnp.float32) * 0.1   # fc2 weight
    w1_t, w2_t = w1.T, w2.T

    # Case 1: lane-dense spatial (16*16 = 256), f32 I/O, batched grid (Bb=4, 2 steps).
    B, H, W = 8, 16, 16
    x = jax.random.normal(kx, (B, C, H, W), dtype=jnp.float32)
    out = jax.block_until_ready(se_layer(x, w1_t, w2_t))
    ref = se_layer_ref(x, w1_t, w2_t)
    assert out.shape == (B, C, H, W)
    assert jnp.allclose(out, ref, atol=1e-5, rtol=1e-5), "f32 mismatch vs reference"

    # Case 2: bf16 I/O (halves HBM traffic; the op is memory-bound).
    x_bf16 = x.astype(jnp.bfloat16)
    out_bf = jax.block_until_ready(se_layer(x_bf16, w1_t, w2_t))
    ref_bf = se_layer_ref(x_bf16, w1_t, w2_t)
    assert jnp.allclose(out_bf.astype(jnp.float32), ref_bf.astype(jnp.float32),
                        atol=5e-2, rtol=5e-2), "bf16 mismatch vs reference"

    # Case 3: non-lane-dense spatial (10*10 -> padded to 128) and batch not
    # divisible by the block (exercises both zero-padding paths).
    B2, H2, W2 = 5, 10, 10
    x2 = jax.random.normal(kx, (B2, C, H2, W2), dtype=jnp.float32)
    out2 = jax.block_until_ready(se_layer(x2, w1_t, w2_t))
    ref2 = se_layer_ref(x2, w1_t, w2_t)
    assert jnp.allclose(out2, ref2, atol=1e-5, rtol=1e-5), "padded-case mismatch"

    print("KERNEL_OK")
</pallas_src>

<mosaic_0001>
module attributes {stable_mosaic.version = 11 : i64} {
  func.func @kernel(%arg0: i32, %arg1: memref<4x64x256xf32, #tpu.memory_space<vmem>>, %arg2: memref<64x4xf32, #tpu.memory_space<vmem>>, %arg3: memref<4x64xf32, #tpu.memory_space<vmem>>, %arg4: memref<4x64x256xf32, #tpu.memory_space<vmem>>) attributes {dimension_semantics = [#tpu.dimension_semantics<parallel>], iteration_bounds = array<i64: 2>, scalar_prefetch = 0 : i64, scratch_operands = 0 : i64, tpu.core_type = #tpu.core_type<tc>, window_params = [{transform_indices = @transform_0, window_bounds = array<i64: 4, 64, 256>}, {pipeline_mode = #tpu.pipeline_mode<synchronous>, transform_indices = @transform_1, window_bounds = array<i64: 64, 4>}, {pipeline_mode = #tpu.pipeline_mode<synchronous>, transform_indices = @transform_2, window_bounds = array<i64: 4, 64>}, {transform_indices = @transform_3, window_bounds = array<i64: 4, 64, 256>}]} {
    %c0 = arith.constant 0 : index
    %c0_0 = arith.constant 0 : index
    %c0_1 = arith.constant 0 : index
    %0 = vector.load %arg1[%c0, %c0_0, %c0_1] : memref<4x64x256xf32, #tpu.memory_space<vmem>>, vector<4x64x256xf32>
    %cst = arith.constant dense<0.000000e+00> : vector<4x64xf32>
    %1 = vector.multi_reduction <add>, %0, %cst [2] : vector<4x64x256xf32> to vector<4x64xf32>
    %cst_2 = arith.constant 3.906250e-03 : f32
    %2 = vector.broadcast %cst_2 : f32 to vector<4x64xf32>
    %3 = arith.mulf %1, %2 : vector<4x64xf32>
    %c0_3 = arith.constant 0 : index
    %c0_4 = arith.constant 0 : index
    %4 = vector.load %arg2[%c0_3, %c0_4] : memref<64x4xf32, #tpu.memory_space<vmem>>, vector<64x4xf32>
    %cst_5 = arith.constant dense<0.000000e+00> : vector<4x4xf32>
    %5 = tpu.matmul %3, %4, %cst_5 {dimension_numbers = #tpu.dot_dimension_numbers<[1], [0], [0], [1], [0, 0, 1, 1], [], []>} : vector<4x64xf32>, vector<64x4xf32>, vector<4x4xf32> -> vector<4x4xf32>
    %cst_6 = arith.constant 0.000000e+00 : f32
    %6 = vector.broadcast %cst_6 : f32 to vector<4x4xf32>
    %7 = arith.maximumf %5, %6 : vector<4x4xf32>
    %c0_7 = arith.constant 0 : index
    %c0_8 = arith.constant 0 : index
    %8 = vector.load %arg3[%c0_7, %c0_8] : memref<4x64xf32, #tpu.memory_space<vmem>>, vector<4x64xf32>
    %cst_9 = arith.constant dense<0.000000e+00> : vector<4x64xf32>
    %9 = tpu.matmul %7, %8, %cst_9 {dimension_numbers = #tpu.dot_dimension_numbers<[1], [0], [0], [1], [0, 0, 1, 1], [], []>} : vector<4x4xf32>, vector<4x64xf32>, vector<4x64xf32> -> vector<4x64xf32>
    %10 = arith.negf %9 : vector<4x64xf32>
    %11 = math.exp %10 : vector<4x64xf32>
    %cst_10 = arith.constant 1.000000e+00 : f32
    %12 = vector.broadcast %cst_10 : f32 to vector<4x64xf32>
    %13 = arith.addf %12, %11 : vector<4x64xf32>
    %14 = arith.divf %12, %13 : vector<4x64xf32>
    %15 = vector.shape_cast %14 : vector<4x64xf32> to vector<4x64x1xf32>
    %c0_11 = arith.constant 0 : index
    %c0_12 = arith.constant 0 : index
    %c0_13 = arith.constant 0 : index
    %16 = vector.load %arg1[%c0_11, %c0_12, %c0_13] : memref<4x64x256xf32, #tpu.memory_space<vmem>>, vector<4x64x256xf32>
    %17 = vector.broadcast %15 : vector<4x64x1xf32> to vector<4x64x256xf32>
    %18 = arith.mulf %16, %17 : vector<4x64x256xf32>
    %c0_14 = arith.constant 0 : index
    %c0_15 = arith.constant 0 : index
    %c0_16 = arith.constant 0 : index
    %19 = vector.load %arg4[%c0_14, %c0_15, %c0_16] : memref<4x64x256xf32, #tpu.memory_space<vmem>>, vector<4x64x256xf32>
    tpu.vector_store %arg4[%c0_14, %c0_15, %c0_16], %18 {strides = array<i32>} : memref<4x64x256xf32, #tpu.memory_space<vmem>>, vector<4x64x256xf32>,
    return
  }
  func.func @transform_0(%arg0: i32) -> (i32, i32, i32) {
    %c0_i32 = arith.constant 0 : i32
    %c0_i32_0 = arith.constant 0 : i32
    %c0_i32_1 = arith.constant 0 : i32
    return %arg0, %c0_i32, %c0_i32_0 : i32, i32, i32
  }
  func.func @transform_1(%arg0: i32) -> (i32, i32) {
    %c0_i32 = arith.constant 0 : i32
    %c0_i32_0 = arith.constant 0 : i32
    %c0_i32_1 = arith.constant 0 : i32
    return %c0_i32, %c0_i32_0 : i32, i32
  }
  func.func @transform_2(%arg0: i32) -> (i32, i32) {
    %c0_i32 = arith.constant 0 : i32
    %c0_i32_0 = arith.constant 0 : i32
    %c0_i32_1 = arith.constant 0 : i32
    return %c0_i32, %c0_i32_0 : i32, i32
  }
  func.func @transform_3(%arg0: i32) -> (i32, i32, i32) {
    %c0_i32 = arith.constant 0 : i32
    %c0_i32_0 = arith.constant 0 : i32
    %c0_i32_1 = arith.constant 0 : i32
    return %arg0, %c0_i32, %c0_i32_0 : i32, i32, i32
  }
}

</mosaic_0001>

<bundles_post_ra>
// kernel: tpu_custom_call.1
= control target key start
LH: loop header
LB: loop body
LE: loop exit
PB: predicated region body
PF: predicated region fallthrough
CT: control target
= control target key end

     0   :  { %8 = vsyncpa [#allocation3], 0  ;;  %s2064_s0 = inlined_call_operand.hbm [shape: f32[8,64,256], index: 0, kind: input, shape index: {}]   ;;  %s2065_s1 = inlined_call_operand.vmem [shape: f32[64,4], index: 1, kind: input, shape index: {}]   ;;  %s2066_s2 = inlined_call_operand.vmem [shape: f32[4,64], index: 2, kind: input, shape index: {}]   ;;  %s2067_s3 = inlined_call_operand.hbm [shape: f32[8,64,256], index: 3, kind: output, shape index: {}]  }
   0x1   :  { %10 = vsyncpa [#allocation3 + $0x1], 0 }
   0x2   :  { %11 = vsyncpa [#allocation4], 0 }
   0x3   :  { %13 = vsyncpa [#allocation4 + $0x1], 0  ;;  %s1372_s12 = smov 0   ;;  %s1374_s13 = smov 0  }
   0x4   :  { %s1376_s14 = smov 0   ;;  %s1378_s15 = smov 0  }
   0x5 LB: > { %s1393_s16 = sadd.s32 4294967295, %s1341_s15   ;;  %s1117_s17 = sadd.s32 4294967294, %s1341_s15   ;;  %s1341_s15 = sphi %s1378_s15, %s2215_s15   ;;  %s1337_s14 = sphi %s1376_s14, %s2214_s14   ;;  %s1333_s13 = sphi %s1374_s13, %s2213_s13   ;;  %s1329_s12 = sphi %s1372_s12, %s2212_s12  }
   0x6   : > { %s1397_s18 = sadd.s32 1, %s1341_s15   ;;  %s26_s19 = sadd.s32 1, %s1337_s14 }
   0x7   : > { %s23_s20 = ssub.s32 %s1341_s15, %s1397_s18  ;;  %p33_p0 = scmp.ne.s32.totalorder %s1337_s14, %s1333_s13 }
   0x8   : > { %p24_p1 = scmp.eq.s32.totalorder %s23_s20, 0  ;;  %p34_p2 = scmp.eq.s32.totalorder %s1341_s15, 0 }
   0x9   : > { %p39_p3 = scmp.ne.s32.totalorder %s1333_s13, %s1329_s12  ;;  %p40_p4 = scmp.eq.s32.totalorder %s1393_s16, 0 }
   0xa   : > { %s1409_s21 = scalar_select %p24_p1, %s1337_s14, %s26_s19  }
   0xb   : > { %p1411_p5 = por %p34_p2, %p33_p0  ;;  %p1415_p6 = por %p40_p4, %p39_p3 }
   0xc   : > { %p105_p7 = scmp.eq.s32.totalorder %s1393_s16, 1  ;;  %p111_p8 = scmp.eq.s32.totalorder %s1117_s17, 1 }
   0xd   : > { %p1200_p10 = scmp.lt.s32.totalorder %s1341_s15, 2  ;;  %s137_s26 = sand.u32 1, %s1337_s14  }
   0xe   : > { %p1422_p11 = por %p105_p7, %p33_p0  ;;  %p1426_p12 = por %p111_p8, %p39_p3 }
   0xf   : > { %s1138_s27 = sshll.u32 %s1341_s15, 13  ;;  %s1120_s28 = sshll.u32 %s137_s26, 9 }
  0x10   : > { %s2116_s24 = scalar_select %p1422_p11, 1, 0 }
  0x11   : > { %s2117_s25 = scalar_select %p1426_p12, 1, 0 }
  0x12   : > { %s1435_s4 = scalar_lea.hbm %s2064_s0, %s1138_s27  ;;  %s141_s5 = scalar_lea.vmem [#allocation2], %s1120_s28 }
  0x13   : > { %s149_s6 = sshll.u32 %s141_s5, 4  ;;  %p1439_p13 = pnand %p1200_p10, %p1411_p5  ;;  %s1443_s6 = int_to_ptr.vmem [resolvable:$true] %s149_s6 }
  0x14   : > { %s1445_s8 = scalar_lea.sflag [#allocation3], %s137_s26  ;;  %s1245_s9 = scalar_lea.hbm %s1435_s4, 8192 }
  0x15   : > { %p1246_p0 = scmp.ne.s32.totalorder %s1435_s4, %s1245_s9  ;;  %p1247_p1 = pneg %p1439_p13 }
  0x16   : > { %s1250_s17 = scalar_lea.hbm %s2064_s0, 16384  ;;  %p1251_p4 = scmp.lt.u32.totalorder %s1435_s4, %s2064_s0 }
  0x17   : > { %p1248_p2 = pnand %p1247_p1, %p1246_p0  ;;  %p1252_p5 = scmp.lt.u32.totalorder %s1250_s17, %s1245_s9 }
  0x18   : > { %p1254_p8 = scmp.lt.u32.totalorder %s1245_s9, %s1435_s4 }
  0x19   : > { %p1249_p3 = pneg %p1248_p2  ;;  %p1253_p7 = por %p1252_p5, %p1251_p4 }
  0x1b   : > { %p1255_p10 = por %p1254_p8, %p1253_p7 }
  0x1d   : > { %p1256_p9 = pnand %p1255_p10, %p1249_p3 }
  0x1f   : > { %1259 = shalt.err (!%p1256_p9)
}
  0x20   : > { %s1260_s22 = scalar_lea.vmem %s1443_s6, 8192  ;;  %s1343_s26 = smov [#allocation2]  }
  0x21   : > { %p1261_p0 = scmp.ne.s32.totalorder %s1443_s6, %s1260_s22  ;;  %s1265_s27 = sshll.u32 %s1343_s26, 4  ;;  %s1266_s27 = int_to_ptr.vmem [resolvable:$false] %s1265_s27 }
  0x22   : > { %s1267_s28 = scalar_lea.vmem %s1266_s27, 16384  ;;  %p1268_p11 = scmp.lt.s32.totalorder %s1443_s6, %s1266_s27 }
  0x23   : > { %p1263_p2 = pnand %p1261_p0, %p1247_p1  ;;  %p1269_p4 = scmp.lt.s32.totalorder %s1267_s28, %s1260_s22 }
  0x25   : > { %p1264_p12 = pneg %p1263_p2  ;;  %p1270_p5 = por %p1269_p4, %p1268_p11 }
  0x27   : > { %p1271_p7 = pnand %p1270_p5, %p1264_p12 }
  0x29   : > { %1274 = shalt.err (!%p1271_p7)
}
  0x2a   : > { %s1344_s29 = smov 256   ;;  %s1345_s30 = smov 16  }
  0x2b   : > { %1195 = dma.hbm_to_vmem [thread:$0]  (!%p1439_p13), %s1435_s4, 8192, %s1443_s6, %s1445_s8, %s1344_s29, %s1344_s29, %s1345_s30  }
  0x2c   : > { %p1124_p9 = scmp.ge.s32.totalorder %s1341_s15, 1  ;;  %p157_p1 = scmp.lt.s32.totalorder %s1341_s15, 3 }
  0x2e   : > { %p158_p3 = pnand %p1124_p9, %p157_p1 }
  0x30   : > { %161 = sbr.rel (%p158_p3) target bundleno = 922 (0x39a), region = 32 }
  0x37   : > { %s1476_s5 = sand.u32 1, %s1333_s13  }
  0x38   : > { %s1125_s9 = sshll.u32 %s1476_s5, 9  ;;  %s164_s10 = scalar_lea.sflag [#allocation3], %s1476_s5 }
  0x39   : > { %s1482_s11 = scalar_lea.vmem [#allocation2], %s1125_s9 }
  0x3a   : > { %1320 = dma.done.wait (%p1415_p6), %s164_s10, 8192  }
  0x3b   : > { %1322 = vsyncadd (%p1415_p6), %s164_s10, 4294959104  ;;  %v1489_v0 = vld [vmem:[%s1482_s11 + $0x80] sm:$0xff]  ;;  %v1492_v1 = vld [vmem:[%s1482_s11 + $0x88] sm:$0xff]  ;;  %vm1347_vm0 = vmmov 0   ;;  %vm435_vm1 = vcmask 130112   ;;  %vm442_vm2 = vcmask 195712  }
  0x3c   : > { %v1495_v2 = vld [vmem:[%s1482_s11] sm:$0xff]  ;;  %v280_v3 = vadd.f32 %v1492_v1, %v1489_v0  ;;  %v1500_v4 = vld [vmem:[%s1482_s11 + $0x8] sm:$0xff]  ;;  %v1503_v5 = vld [vmem:[%s1482_s11 + $0x90] sm:$0xff]  ;;  %vm449_vm3 = vcmask 261312   ;;  %vm456_vm4 = vcmask 326912   ;;  %vm463_vm5 = vcmask 392512  }
  0x3d   : > { %2119 = vst [vmem:[#allocation8_spill] sm:$0xff] %v1503_v5  ;;  %v1506_v6 = vld [vmem:[%s1482_s11 + $0x98] sm:$0xff]  ;;  %v256_v7 = vadd.f32 %v1500_v4, %v1495_v2  ;;  %v1511_v8 = vld [vmem:[%s1482_s11 + $0x10] sm:$0xff]  ;;  %v1521_v12 = vld [vmem:[%s1482_s11 + $0xa0] sm:$0xff]  ;;  %vm470_vm6 = vcmask 458112   ;;  %vm477_vm7 = vcmask 523712  }
  0x3e   : > { %2120 = vst [vmem:[#allocation9_spill] sm:$0xff] %v1506_v6  ;;  %v1514_v9 = vld [vmem:[%s1482_s11 + $0x18] sm:$0xff]  ;;  %281 = vadd.xlane.f32.xlu1 %v280_v3  ;;  %v283_v10 = vadd.f32 %v1506_v6, %v1503_v5  ;;  %v1524_v13 = vld [vmem:[%s1482_s11 + $0xa8] sm:$0xff]  ;;  %v1527_v14 = vld [vmem:[%s1482_s11 + $0x20] sm:$0xff]  ;;  %vm596_vm8 = vcmask 1041409   ;;  %vm598_vm9 = vcmask 1042434  }
  0x3f   : > { %257 = vadd.xlane.f32.xlu0 %v256_v7  ;;  %v259_v11 = vadd.f32 %v1514_v9, %v1511_v8  ;;  %2121 = vst [vmem:[#allocation10_spill] sm:$0xff] %v1524_v13  ;;  %v1530_v15 = vld [vmem:[%s1482_s11 + $0x28] sm:$0xff]  ;;  %v286_v16 = vadd.f32 %v1524_v13, %v1521_v12  ;;  %v1537_v18 = vld [vmem:[%s1482_s11 + $0x110] sm:$0xff]  ;;  %v1540_v19 = vld [vmem:[%s1482_s11 + $0x118] sm:$0xff]  ;;  %vm600_vm10 = vcmask 1043459   ;;  %vm602_vm11 = vcmask 523264  }
  0x40   : > { %v262_v17 = vadd.f32 %v1530_v15, %v1527_v14  ;;  %2122 = vst [vmem:[#allocation11_spill] sm:$0xff] %v1537_v18  ;;  %2123 = vst [vmem:[#allocation12_spill] sm:$0xff] %v1540_v19  ;;  %v1543_v20 = vld [vmem:[%s1482_s11 + $0x100] sm:$0xff]  ;;  %v1546_v21 = vld [vmem:[%s1482_s11 + $0x108] sm:$0xff]  ;;  %v307_v22 = vadd.f32 %v1540_v19, %v1537_v18  ;;  %vm681_vm12 = vcmask 1043456   ;;  %vm677_vm13 = vcmask 31744  }
  0x41   : > { %2124 = vst [vmem:[#allocation13_spill] sm:$0xff] %v1543_v20  ;;  %2125 = vst [vmem:[#allocation14_spill] sm:$0xff] %v1546_v21  ;;  %v304_v23 = vadd.f32 %v1546_v21, %v1543_v20  ;;  %v1553_v24 = vld [vmem:[%s1482_s11 + $0xb0] sm:$0xff]  ;;  %v1556_v25 = vld [vmem:[%s1482_s11 + $0xb8] sm:$0xff]  ;;  %s1887_s6 = scalar_lea.vmem [#allocation5], %s1125_s9  ;;  %s1140_s9 = sshll.u32 %s1393_s16, 13 }
  0x42   : > { %284 = vadd.xlane.f32.xlu1 %v283_v10  ;;  %2126 = vst [vmem:[#allocation15_spill] sm:$0xff] %v1553_v24  ;;  %2127 = vst [vmem:[#allocation16_spill] sm:$0xff] %v1556_v25  ;;  %v1559_v26 = vld [vmem:[%s1482_s11 + $0x30] sm:$0xff]  ;;  %v1562_v27 = vld [vmem:[%s1482_s11 + $0x38] sm:$0xff]  ;;  %v289_v28 = vadd.f32 %v1556_v25, %v1553_v24  ;;  %s1044_s7 = sshll.u32 %s1887_s6, 4  ;;  %s2014_s19 = scalar_lea.hbm %s2067_s3, %s1140_s9  ;;  %s2016_s7 = int_to_ptr.vmem [resolvable:$true] %s1044_s7 }
  0x43   : > { %260 = vadd.xlane.f32.xlu0 %v259_v11  ;;  %v265_v29 = vadd.f32 %v1562_v27, %v1559_v26  ;;  %v1569_v30 = vld [vmem:[%s1482_s11 + $0x180] sm:$0xff]  ;;  %v1572_v31 = vld [vmem:[%s1482_s11 + $0x188] sm:$0xff]  ;;  %v1591_v38 = vld [vmem:[%s1482_s11 + $0x190] sm:$0xff]  ;;  %s1030_s16 = scalar_lea.sflag [#allocation4], %s1476_s5  ;;  %s1275_s20 = scalar_lea.vmem %s2016_s7, 8192 }
  0x44   : > { %2128 = vst [vmem:[#allocation17_spill] sm:$0xff] %v1569_v30  ;;  %2129 = vst [vmem:[#allocation18_spill] sm:$0xff] %v1572_v31  ;;  %v1575_v32 = vld [vmem:[%s1482_s11 + $0x120] sm:$0xff]  ;;  %v1578_v33 = vld [vmem:[%s1482_s11 + $0x128] sm:$0xff]  ;;  %v328_v34 = vadd.f32 %v1572_v31, %v1569_v30  ;;  %p1276_p6 = scmp.ne.s32.totalorder %s2016_s7, %s1275_s20  ;;  %p2209_p11 = scmp.ne.s32.totalorder %s2116_s24, 0 }
  0x45   : > { %2130 = vst [vmem:[#allocation19_spill] sm:$0xff] %v1575_v32  ;;  %2131 = vst [vmem:[#allocation20_spill] sm:$0xff] %v1578_v33  ;;  %v310_v35 = vadd.f32 %v1578_v33, %v1575_v32  ;;  %v1585_v36 = vld [vmem:[%s1482_s11 + $0x40] sm:$0xff]  ;;  %v1588_v37 = vld [vmem:[%s1482_s11 + $0x48] sm:$0xff]  ;;  %s1349_s22 = smov [#allocation5]  }
  0x46   : > { %287 = vadd.xlane.f32.xlu1 %v286_v16  ;;  %2132 = vst [vmem:[#allocation21_spill] sm:$0xff] %v1591_v38  ;;  %v1594_v39 = vld [vmem:[%s1482_s11 + $0x198] sm:$0xff]  ;;  %v268_v40 = vadd.f32 %v1588_v37, %v1585_v36  ;;  %v1601_v42 = vld [vmem:[%s1482_s11 + $0x130] sm:$0xff]  ;;  %v1607_v44 = vld [vmem:[%s1482_s11 + $0xc0] sm:$0xff]  ;;  %p1277_p12 = pnand %p1276_p6, %p2209_p11  ;;  %s1279_s26 = sshll.u32 %s1349_s22, 4  ;;  %s1280_s26 = int_to_ptr.vmem [resolvable:$false] %s1279_s26 }
  0x47   : > { %263 = vadd.xlane.f32.xlu0 %v262_v17  ;;  %2133 = vst [vmem:[#allocation22_spill] sm:$0xff] %v1594_v39  ;;  %v331_v41 = vadd.f32 %v1594_v39, %v1591_v38  ;;  %2134 = vst [vmem:[#allocation23_spill] sm:$0xff] %v1601_v42  ;;  %v1604_v43 = vld [vmem:[%s1482_s11 + $0x138] sm:$0xff]  ;;  %v1610_v45 = vld [vmem:[%s1482_s11 + $0xc8] sm:$0xff]  ;;  %v1346_v38 = vmov 0.0|0.0   ;;  %s1281_s27 = scalar_lea.vmem %s1280_s26, 16384  ;;  %p1282_p8 = scmp.lt.s32.totalorder %s2016_s7, %s1280_s26 }
  0x48   : > { %2135 = vst [vmem:[#allocation24_spill] sm:$0xff] %v1604_v43  ;;  %2136 = vst [vmem:[#allocation25_spill] sm:$0xff] %v1607_v44  ;;  %v313_v46 = vadd.f32 %v1604_v43, %v1601_v42  ;;  %v292_v47 = vadd.f32 %v1610_v45, %v1607_v44  ;;  %v1617_v48 = vld [vmem:[%s1482_s11 + $0x50] sm:$0xff]  ;;  %v1620_v49 = vld [vmem:[%s1482_s11 + $0x58] sm:$0xff]  ;;  %1176 = vmatprep.subr.bf16.mxu0 %v1346_v38  ;;  %p1278_p13 = pneg %p1277_p12  ;;  %p1283_p10 = scmp.lt.s32.totalorder %s1281_s27, %s1275_s20 }
  0x49   : > { %2137 = vst [vmem:[#allocation26_spill] sm:$0xff] %v1610_v45  ;;  %v1623_v50 = vld [vmem:[%s1482_s11 + $0x1a0] sm:$0xff]  ;;  %v1626_v51 = vld [vmem:[%s1482_s11 + $0x1a8] sm:$0xff]  ;;  %v271_v52 = vadd.f32 %v1620_v49, %v1617_v48  ;;  %v1639_v56 = vld [vmem:[%s1482_s11 + $0xd0] sm:$0xff] }
  0x4a   : > { %308 = vadd.xlane.f32.xlu1 %v307_v22  ;;  %2138 = vst [vmem:[#allocation27_spill] sm:$0xff] %v1623_v50  ;;  %2139 = vst [vmem:[#allocation28_spill] sm:$0xff] %v1626_v51  ;;  %v334_v53 = vadd.f32 %v1626_v51, %v1623_v50  ;;  %v1633_v54 = vld [vmem:[%s1482_s11 + $0x140] sm:$0xff]  ;;  %v1636_v55 = vld [vmem:[%s1482_s11 + $0x148] sm:$0xff]  ;;  %p1284_p0 = por %p1283_p10, %p1282_p8 }
  0x4b   : > { %305 = vadd.xlane.f32.xlu0 %v304_v23  ;;  %2140 = vst [vmem:[#allocation29_spill] sm:$0xff] %v1633_v54  ;;  %2141 = vst [vmem:[#allocation30_spill] sm:$0xff] %v1636_v55  ;;  %v1642_v57 = vld [vmem:[%s1482_s11 + $0xd8] sm:$0xff]  ;;  %v316_v58 = vadd.f32 %v1636_v55, %v1633_v54  ;;  %v1649_v60 = vld [vmem:[%s1482_s11 + $0x60] sm:$0xff] }
  0x4c   : > { %2142 = vst [vmem:[#allocation31_spill] sm:$0xff] %v1639_v56  ;;  %2143 = vst [vmem:[#allocation32_spill] sm:$0xff] %v1642_v57  ;;  %v295_v59 = vadd.f32 %v1642_v57, %v1639_v56  ;;  %v1652_v61 = vld [vmem:[%s1482_s11 + $0x68] sm:$0xff]  ;;  %v1655_v62 = vld [vmem:[%s1482_s11 + $0x1b0] sm:$0xff]  ;;  %p1285_p2 = pnand %p1284_p0, %p1278_p13 }
  0x4d   : > { %2144 = vst [vmem:[#allocation33_spill] sm:$0xff] %v1655_v62  ;;  %v1658_v63 = vld [vmem:[%s1482_s11 + $0x1b8] sm:$0xff]  ;;  %v274_v3 = vadd.f32 %v1652_v61, %v1649_v60  ;;  %v1665_v10 = vld [vmem:[%s1482_s11 + $0x150] sm:$0xff]  ;;  %v1671_v16 = vld [vmem:[%s1482_s11 + $0xe0] sm:$0xff] }
  0x4e   : > { %290 = vadd.xlane.f32.xlu1 %v289_v28  ;;  %2145 = vst [vmem:[#allocation34_spill] sm:$0xff] %v1658_v63  ;;  %v337_v7 = vadd.f32 %v1658_v63, %v1655_v62  ;;  %2146 = vst [vmem:[#allocation35_spill] sm:$0xff] %v1665_v10  ;;  %v1668_v11 = vld [vmem:[%s1482_s11 + $0x158] sm:$0xff]  ;;  %v1674_v17 = vld [vmem:[%s1482_s11 + $0xe8] sm:$0xff] }
  0x4f   : > { %266 = vadd.xlane.f32.xlu0 %v265_v29  ;;  %2147 = vst [vmem:[#allocation36_spill] sm:$0xff] %v1668_v11  ;;  %2148 = vst [vmem:[#allocation37_spill] sm:$0xff] %v1671_v16  ;;  %v319_v22 = vadd.f32 %v1668_v11, %v1665_v10  ;;  %v298_v23 = vadd.f32 %v1674_v17, %v1671_v16  ;;  %v1681_v28 = vld [vmem:[%s1482_s11 + $0x70] sm:$0xff]  ;;  %v1684_v29 = vld [vmem:[%s1482_s11 + $0x78] sm:$0xff] }
  0x50   : > { %2149 = vst [vmem:[#allocation38_spill] sm:$0xff] %v1674_v17  ;;  %v1732_v62 = vld [vmem:[%s1482_s11 + $0x1f8] sm:$0xff] }
  0x51   : > { %2161 = vst [vmem:[#allocation50_spill] sm:$0xff] %v1732_v62 }
  0x52   : > { %329 = vadd.xlane.f32.xlu1 %v328_v34  ;;  %v1687_v34 = vld [vmem:[%s1482_s11 + $0x1c0] sm:$0xff] }
  0x53   : > { %311 = vadd.xlane.f32.xlu0 %v310_v35  ;;  %2150 = vst [vmem:[#allocation39_spill] sm:$0xff] %v1687_v34  ;;  %v1690_v35 = vld [vmem:[%s1482_s11 + $0x1c8] sm:$0xff] }
  0x54   : > { %2151 = vst [vmem:[#allocation40_spill] sm:$0xff] %v1690_v35 }
  0x56   : > { %269 = vadd.xlane.f32.xlu1 %v268_v40  ;;  %v277_v40 = vadd.f32 %v1684_v29, %v1681_v28 }
  0x57   : > { %332 = vadd.xlane.f32.xlu0 %v331_v41  ;;  %v340_v41 = vadd.f32 %v1690_v35, %v1687_v34  ;;  %v1735_v35 = vld [vmem:[%s1482_s11 + $0x1e0] sm:$0xff]  ;;  %v1738_v34 = vld [vmem:[%s1482_s11 + $0x1e8] sm:$0xff] }
  0x58   : > { %2162 = vst [vmem:[#allocation51_spill] sm:$0xff] %v1735_v35  ;;  %2163 = vst [vmem:[#allocation52_spill] sm:$0xff] %v1738_v34 }
  0x5a   : > { %314 = vadd.xlane.f32.xlu1 %v313_v46  ;;  %v1697_v46 = vld [vmem:[%s1482_s11 + $0x160] sm:$0xff] }
  0x5b   : > { %293 = vadd.xlane.f32.xlu0 %v292_v47  ;;  %2152 = vst [vmem:[#allocation41_spill] sm:$0xff] %v1697_v46  ;;  %v1700_v47 = vld [vmem:[%s1482_s11 + $0x168] sm:$0xff] }
  0x5c   : > { %2153 = vst [vmem:[#allocation42_spill] sm:$0xff] %v1700_v47 }
  0x5e   : > { %272 = vadd.xlane.f32.xlu1 %v271_v52  ;;  %v1703_v52 = vld [vmem:[%s1482_s11 + $0xf0] sm:$0xff] }
  0x5f   : > { %335 = vadd.xlane.f32.xlu0 %v334_v53  ;;  %2154 = vst [vmem:[#allocation43_spill] sm:$0xff] %v1703_v52  ;;  %v1706_v53 = vld [vmem:[%s1482_s11 + $0xf8] sm:$0xff] }
  0x60   : > { %2155 = vst [vmem:[#allocation44_spill] sm:$0xff] %v1706_v53 }
  0x62   : > { %317 = vadd.xlane.f32.xlu1 %v316_v58  ;;  %v322_v58 = vadd.f32 %v1700_v47, %v1697_v46 }
  0x63   : > { %296 = vadd.xlane.f32.xlu0 %v295_v59  ;;  %v301_v59 = vadd.f32 %v1706_v53, %v1703_v52 }
  0x66   : > { %275 = vadd.xlane.f32.xlu1 %v274_v3  ;;  %v1713_v3 = vld [vmem:[%s1482_s11 + $0x170] sm:$0xff] }
  0x67   : > { %338 = vadd.xlane.f32.xlu0 %v337_v7  ;;  %2156 = vst [vmem:[#allocation45_spill] sm:$0xff] %v1713_v3  ;;  %v1716_v7 = vld [vmem:[%s1482_s11 + $0x178] sm:$0xff] }
  0x68   : > { %2157 = vst [vmem:[#allocation46_spill] sm:$0xff] %v1716_v7  ;;  %v325_v63 = vadd.f32 %v1716_v7, %v1713_v3 }
  0x6a   : > { %320 = vadd.xlane.f32.xlu1 %v319_v22  ;;  %v1719_v22 = vld [vmem:[%s1482_s11 + $0x1d0] sm:$0xff] }
  0x6b   : > { %299 = vadd.xlane.f32.xlu0 %v298_v23  ;;  %2158 = vst [vmem:[#allocation47_spill] sm:$0xff] %v1719_v22  ;;  %v1722_v23 = vld [vmem:[%s1482_s11 + $0x1d8] sm:$0xff] }
  0x6c   : > { %2159 = vst [vmem:[#allocation48_spill] sm:$0xff] %v1722_v23 }
  0x6e   : > { %278 = vadd.xlane.f32.xlu1 %v277_v40  ;;  %v343_v40 = vadd.f32 %v1722_v23, %v1719_v22  ;;  %v385_v23 = vld [vmem:[%s2065_s1 + $0x8] sm:$0xff] }
  0x6f   : > { %341 = vadd.xlane.f32.xlu0 %v340_v41  ;;  %v1729_v41 = vld [vmem:[%s1482_s11 + $0x1f0] sm:$0xff] }
  0x70   : > { %2160 = vst [vmem:[#allocation49_spill] sm:$0xff] %v1729_v41  ;;  %v349_v39 = vadd.f32 %v1732_v62, %v1729_v41 }
  0x72   : > { %323 = vadd.xlane.f32.xlu1 %v322_v58  ;;  %v346_v58 = vadd.f32 %v1738_v34, %v1735_v35 }
  0x73   : > { %302 = vadd.xlane.f32.xlu0 %v301_v59  ;;  %v384_v59 = vld [vmem:[%s2065_s1] sm:$0xff] }
  0x74   : > { %v1177_v22 = vpack.c.bf16 %v385_v23, %v384_v59  ;;  %v390_v59 = vld [vmem:[%s2065_s1 + $0x30] sm:$0xff] }
  0x76   : > { %326 = vadd.xlane.f32.xlu1 %v325_v63  ;;  %1178 = vmatpush3.bf16.msra.mxu0 %v1177_v22  ;;  %v386_v63 = vld [vmem:[%s2065_s1 + $0x10] sm:$0xff]  ;;  %v389_v22 = vld [vmem:[%s2065_s1 + $0x28] sm:$0xff] }
  0x77   : > { %344 = vadd.xlane.f32.xlu0 %v343_v40  ;;  %1179 = vmatprep.subr.bf16.mxu0 %v1346_v38 }
  0x7a   : > { %350 = vadd.xlane.f32.xlu1 %v349_v39  ;;  %v387_v39 = vld [vmem:[%s2065_s1 + $0x18] sm:$0xff] }
  0x7b   : > { %347 = vadd.xlane.f32.xlu0 %v346_v58  ;;  %v1180_v40 = vpack.c.bf16 %v387_v39, %v386_v63  ;;  %v388_v58 = vld [vmem:[%s2065_s1 + $0x20] sm:$0xff]  ;;  %v391_v63 = vld [vmem:[%s2065_s1 + $0x38] sm:$0xff] }
  0x7c   : > { %v1183_v23 = vpack.c.bf16 %v389_v22, %v388_v58  ;;  %v1186_v39 = vpack.c.bf16 %v391_v63, %v390_v59 }
  0x7d   : > { %1181 = vmatpush3.bf16.msra.mxu0 %v1180_v40  ;;  %v1348_v40 = vmov 0.0  }
  0x7e   : > { %1182 = vmatprep.subr.bf16.mxu0 %v1346_v38  ;;  %1168 = vmatprep.mubr.msk.f32.mxu0 %vm1347_vm0, %v1348_v40 }
  0x7f   : > { %1171 = vmatprep.subr.mxu1 %v1348_v40  ;;  %1173 = vmatprep.mubr.msk.f32.mxu1 %vm1347_vm0, %v1348_v40 }
  0x81   : > { %1184 = vmatpush3.bf16.msra.mxu0 %v1183_v23 }
  0x82   : > { %1185 = vmatprep.subr.bf16.mxu0 %v1346_v38 }
  0x85   : > { %1187 = vmatpush3.bf16.msra.mxu0 %v1186_v39  ;;  %v424_v39 = vlaneseq }
  0x87   : > { %v425_v40 = vand.u32 127, %v424_v39  ;;  %v1772_v47 = vshrl.u32 %v424_v39, 7 }
  0x89   : > { %v430_v46 = vadd.s32 4294967288, %v425_v40  ;;  %v437_v43 = vadd.s32 4294967280, %v425_v40  ;;  %v444_v55 = vadd.s32 4294967272, %v425_v40  ;;  %v451_v54 = vadd.s32 4294967264, %v425_v40 }
  0x8a   : > { %v1779_v18 = vsub.s32 %v425_v40, %v1772_v47  ;;  %v458_v39 = vadd.s32 4294967256, %v425_v40  ;;  %v465_v53 = vadd.s32 4294967248, %v425_v40 }
  0x8b   : > { %v1782_v33 = vsub.s32 %v430_v46, %v1772_v47  ;;  %v1785_v32 = vsub.s32 %v437_v43, %v1772_v47  ;;  %v1790_v20 = vsub.s32 %v444_v55, %v1772_v47  ;;  %v1793_v57 = vsub.s32 %v451_v54, %v1772_v47 }
  0x8c   : > { %v1801_v55 = vsub.s32 %v465_v53, %v1772_v47 }
  0xcb   : > { %v282_v62 = vpop.xlane.xlu1 %281 }
  0xcc   : > { %v258_v41 = vpop.xlane.xlu0 %257  ;;  %v360_v46 = vmul.f32 0.00390625, %v282_v62 }
  0xcd   : > { %v352_v44 = vmul.f32 0.00390625, %v258_v41 }
  0xcf   : > { %v285_v58 = vpop.xlane.xlu1 %284 }
  0xd0   : > { %v261_v22 = vpop.xlane.xlu0 %260  ;;  %v361_v21 = vmul.f32 0.00390625, %v285_v58  ;;  %v1798_v58 = vsub.s32 %v458_v39, %v1772_v47 }
  0xd1   : > { %v353_v17 = vmul.f32 0.00390625, %v261_v22 }
  0xd2   : > { %v486_v5 = vrot.slane %v361_v21, %v1782_v33  ;;  %v429_v21 = vrot.slane %v352_v44, %v1779_v18 }
  0xd3   : > { %v288_v38 = vpop.xlane.xlu1 %287 }
  0xd4   : > { %v264_v23 = vpop.xlane.xlu0 %263  ;;  %v362_v16 = vmul.f32 0.00390625, %v288_v38  ;;  %v472_v38 = vadd.s32 4294967240, %v425_v40 }
  0xd5   : > { %v354_v43 = vmul.f32 0.00390625, %v264_v23  ;;  %v482_v23 = vrot.slane %v360_v46, %v1779_v18 }
  0xd7   : > { %v309_v34 = vpop.xlane.xlu1 %308 }
  0xd8   : > { %v306_v35 = vpop.xlane.xlu0 %305  ;;  %v369_v25 = vmul.f32 0.00390625, %v309_v34  ;;  %v434_v34 = vrot.slane %v353_v17, %v1782_v33  ;;  %v487_v17 = vsel %vm435_vm1, %v486_v5, %v482_v23 }
  0xd9   : > { %v368_v24 = vmul.f32 0.00390625, %v306_v35  ;;  %v441_v35 = vrot.slane %v354_v43, %v1785_v32 }
  0xda   : > { %v525_v41 = vrot.slane %v369_v25, %v1782_v33 }
  0xdb   : > { %v291_v51 = vpop.xlane.xlu1 %290  ;;  %v521_v53 = vrot.slane %v368_v24, %v1779_v18  ;;  %v436_v24 = vsel %vm435_vm1, %v434_v34, %v429_v21 }
  0xdc   : > { %v267_v50 = vpop.xlane.xlu0 %266  ;;  %v363_v45 = vmul.f32 0.00390625, %v291_v51  ;;  %v491_v51 = vrot.slane %v362_v16, %v1785_v32 }
  0xdd   : > { %v355_v6 = vmul.f32 0.00390625, %v267_v50 }
  0xde   : > { %v496_v39 = vrot.slane %v363_v45, %v1790_v20  ;;  %v492_v45 = vsel %vm442_vm2, %v491_v51, %v487_v17 }
  0xdf   : > { %v330_v7 = vpop.xlane.xlu1 %329 }
  0xe0   : > { %v312_v3 = vpop.xlane.xlu0 %311  ;;  %v497_v5 = vsel %vm449_vm3, %v496_v39, %v492_v45 }
  0xe1   : > { %v370_v13 = vmul.f32 0.00390625, %v312_v3  ;;  %v376_v3 = vmul.f32 0.00390625, %v330_v7  ;;  %v443_v7 = vsel %vm442_vm2, %v441_v35, %v436_v24 }
  0xe3   : > { %v270_v31 = vpop.xlane.xlu1 %269  ;;  %v530_v16 = vrot.slane %v370_v13, %v1785_v32 }
  0xe4   : > { %v333_v59 = vpop.xlane.xlu0 %332  ;;  %v356_v62 = vmul.f32 0.00390625, %v270_v31  ;;  %v448_v31 = vrot.slane %v355_v6, %v1790_v20  ;;  %v1820_v6 = vsub.s32 %v472_v38, %v1772_v47 }
  0xe5   : > { %v377_v50 = vmul.f32 0.00390625, %v333_v59 }
  0xe6   : > { %v455_v59 = vrot.slane %v356_v62, %v1793_v57  ;;  %v560_v62 = vrot.slane %v376_v3, %v1779_v18 }
  0xe7   : > { %v315_v63 = vpop.xlane.xlu1 %314  ;;  %v564_v44 = vrot.slane %v377_v50, %v1782_v33 }
  0xe8   : > { %v294_v30 = vpop.xlane.xlu0 %293  ;;  %v371_v40 = vmul.f32 0.00390625, %v315_v63  ;;  %v526_v63 = vsel %vm435_vm1, %v525_v41, %v521_v53 }
  0xe9   : > { %v364_v43 = vmul.f32 0.00390625, %v294_v30  ;;  %v450_v30 = vsel %vm449_vm3, %v448_v31, %v443_v7  ;;  %v531_v38 = vsel %vm442_vm2, %v530_v16, %v526_v63 }
  0xea   : > { %v535_v23 = vrot.slane %v371_v40, %v1790_v20  ;;  %v457_v51 = vsel %vm456_vm4, %v455_v59, %v450_v30 }
  0xeb   : > { %v1768_v11 = vpop.xlane.xlu1 %272  ;;  %v501_v50 = vrot.slane %v364_v43, %v1793_v57 }
  0xec   : > { %v1770_v10 = vpop.xlane.xlu0 %335  ;;  %v357_v13 = vmul.f32 0.00390625, %v1768_v11  ;;  %v565_v11 = vsel %vm435_vm1, %v564_v44, %v560_v62  ;;  %v536_v40 = vsel %vm449_vm3, %v535_v23, %v531_v38 }
  0xed   : > { %v378_v53 = vmul.f32 0.00390625, %v1770_v10  ;;  %v502_v10 = vsel %vm456_vm4, %v501_v50, %v497_v5 }
  0xef   : > { %v1774_v42 = vpop.xlane.xlu1 %317 }
  0xf0   : > { %v1776_v19 = vpop.xlane.xlu0 %296  ;;  %v372_v34 = vmul.f32 0.00390625, %v1774_v42  ;;  %v462_v42 = vrot.slane %v357_v13, %v1798_v58 }
  0xf1   : > { %v365_v35 = vmul.f32 0.00390625, %v1776_v19 }
  0xf2   : > { %v540_v19 = vrot.slane %v372_v34, %v1793_v57  ;;  %v464_v63 = vsel %vm463_vm5, %v462_v42, %v457_v51 }
  0xf3   : > { %v1787_v52 = vpop.xlane.xlu1 %275 }
  0xf4   : > { %v1795_v56 = vpop.xlane.xlu0 %338  ;;  %v358_v17 = vmul.f32 0.00390625, %v1787_v52  ;;  %v541_v13 = vsel %vm456_vm4, %v540_v19, %v536_v40 }
  0xf5   : > { %v379_v21 = vmul.f32 0.00390625, %v1795_v56  ;;  %v569_v56 = vrot.slane %v378_v53, %v1785_v32 }
  0xf7   : > { %v321_v54 = vpop.xlane.xlu1 %320  ;;  %v574_v52 = vrot.slane %v379_v21, %v1790_v20  ;;  %v570_v51 = vsel %vm442_vm2, %v569_v56, %v565_v11 }
  0xf8   : > { %v300_v22 = vpop.xlane.xlu0 %299  ;;  %v373_v18 = vmul.f32 0.00390625, %v321_v54  ;;  %v506_v54 = vrot.slane %v365_v35, %v1798_v58 }
  0xf9   : > { %v366_v39 = vmul.f32 0.00390625, %v300_v22 }
  0xfa   : > { %v545_v45 = vrot.slane %v373_v18, %v1798_v58  ;;  %v507_v23 = vsel %vm463_vm5, %v506_v54, %v502_v10 }
  0xfb   : > { %v279_v46 = vpop.xlane.xlu1 %278  ;;  %v511_v44 = vrot.slane %v366_v39, %v1801_v55 }
  0xfc   : > { %v342_v25 = vpop.xlane.xlu0 %341  ;;  %v359_v22 = vmul.f32 0.00390625, %v279_v46  ;;  %v469_v46 = vrot.slane %v358_v17, %v1801_v55  ;;  %v546_v50 = vsel %vm463_vm5, %v545_v45, %v541_v13 }
  0xfd   : > { %v380_v16 = vmul.f32 0.00390625, %v342_v25  ;;  %v512_v35 = vsel %vm470_vm6, %v511_v44, %v507_v23  ;;  %v763_v44 = vsub.s32 0, %v1772_v47 }
  0xfe   : > { %v476_v34 = vrot.slane %v359_v22, %v1820_v6  ;;  %v471_v42 = vsel %vm470_vm6, %v469_v46, %v464_v63  ;;  %v868_v46 = vsub.s32 3, %v1772_v47 }
  0xff   : > { %v324_v33 = vpop.xlane.xlu1 %323  ;;  %v579_v30 = vrot.slane %v380_v16, %v1793_v57  ;;  %v575_v57 = vsel %vm449_vm3, %v574_v52, %v570_v51  ;;  %v798_v52 = vsub.s32 1, %v1772_v47 }
 0x100   : > { %v303_v41 = vpop.xlane.xlu0 %302  ;;  %v374_v31 = vmul.f32 0.00390625, %v324_v33 }
 0x101   : > { %v367_v3 = vmul.f32 0.00390625, %v303_v41 }
 0x102   : > { %v550_v25 = vrot.slane %v374_v31, %v1801_v55  ;;  %v478_v31 = vsel %vm477_vm7, %v476_v34, %v471_v42 }
 0x103   : > { %v327_v59 = vpop.xlane.xlu1 %326  ;;  %v516_v5 = vrot.slane %v367_v3, %v1820_v6 }
 0x104   : > { %v375_v43 = vmul.f32 0.00390625, %v327_v59  ;;  %v345_v24 = vpop.xlane.xlu0 %344  ;;  %v551_v53 = vsel %vm470_vm6, %v550_v25, %v546_v50 }
 0x105   : > { %v381_v7 = vmul.f32 0.00390625, %v345_v24  ;;  %v517_v18 = vsel %vm477_vm7, %v516_v5, %v512_v35  ;;  %v833_v5 = vsub.s32 2, %v1772_v47 }
 0x106   : > { %v555_v32 = vrot.slane %v375_v43, %v1820_v6  ;;  %v597_v19 = vsel %vm596_vm8, %v517_v18, %v478_v31  ;;  %v2167_v31 = vld [vmem:[#allocation25_spill] sm:$0xff] }
 0x107   : > { %v351_v62 = vpop.xlane.xlu1 %350  ;;  %v584_v33 = vrot.slane %v381_v7, %v1798_v58  ;;  %v580_v58 = vsel %vm456_vm4, %v579_v30, %v575_v57 }
 0x108   : > { %v348_v20 = vpop.xlane.xlu0 %347  ;;  %v383_v38 = vmul.f32 0.00390625, %v351_v62  ;;  %v556_v21 = vsel %vm477_vm7, %v555_v32, %v551_v53 }
 0x109   : > { %v382_v41 = vmul.f32 0.00390625, %v348_v20  ;;  %v585_v3 = vsel %vm463_vm5, %v584_v33, %v580_v58  ;;  %v599_v17 = vsel %vm598_vm9, %v556_v21, %v597_v19  ;;  %v2165_v58 = vld [vmem:[#allocation8_spill] sm:$0xff] }
 0x10a   : > { %v594_v39 = vrot.slane %v383_v38, %v1820_v6 }
 0x10b   : > { %v589_v11 = vrot.slane %v382_v41, %v1801_v55  ;;  %v676_v55 = vld [vmem:[%s2066_s2] sm:$0xf] }
 0x10c   : > { %1172 = vmatpush3.msk.msra.mxu1 %vm681_vm12, %v676_v55 }
 0x10d   : > { %v590_v40 = vsel %vm470_vm6, %v589_v11, %v585_v3  ;;  %v2166_v11 = vld [vmem:[#allocation9_spill] sm:$0xff]  ;;  %v2168_v3 = vld [vmem:[#allocation26_spill] sm:$0xff] }
 0x10e   : > { %v595_v6 = vsel %vm477_vm7, %v594_v39, %v590_v40  ;;  %v2164_v39 = vld [vmem:[#allocation10_spill] sm:$0xff] }
 0x10f   : > { %v601_v16 = vsel %vm600_vm10, %v595_v6, %v599_v17  ;;  %v2169_v6 = vld [vmem:[#allocation15_spill] sm:$0xff] }
 0x110   : > { %1169 = vmatmul.mubr.msk.f32.vlgmr.msra.gmra.mrb[0].mxu0 %vm602_vm11, %v601_v16  ;;  %v2170_v16 = vld [vmem:[#allocation16_spill] sm:$0xff] }
 0x1e3   : > { %v671_v59 = vpop.f32.mrb[0].mxu0 }
 0x1e4   : > { %v675_v10 = vmax.f32 %v671_v59, 0.0  ;;  %v1170_v54 = vpop.f32.mrb[1].mxu0  ;;  %v2171_v59 = vld [vmem:[#allocation37_spill] sm:$0xff] }
 0x1e5   : > { %v2172_v54 = vld [vmem:[#allocation38_spill] sm:$0xff] }
 0x1e6   : > { %1174 = vmatmul.mubr.msk.f32.vlgmr.msra.gmra.mrb[0].mxu1 %vm677_vm13, %v675_v10 }
 0x2b9   : > { %v751_v22 = vpop.f32.mrb[0].mxu1 }
 0x2ba   : > { %v1130_v43 = vmul.f32 -1.442695, %v751_v22  ;;  %v1175_v24 = vpop.f32.mrb[1].mxu1 }
 0x2bc   : > { %1241 = vpow2.f32 %v1130_v43 }
 0x2c6   : > { %v1242_v56 = vpop.eup %1241 }
 0x2c7   : > { %v758_v45 = vadd.f32 1.0, %v1242_v56  ;;  %v2173_v56 = vld [vmem:[#allocation31_spill] sm:$0xff] }
 0x2c9   : > { %1243 = vrcp.f32 %v758_v45 }
 0x2d3   : > { %v1244_v7 = vpop.eup %1243 }
 0x2d4   : > { %v764_v63 = vrot.slane %v1244_v7, %v763_v44  ;;  %v799_v25 = vrot.slane %v1244_v7, %v798_v52  ;;  %v834_v13 = vrot.slane %v1244_v7, %v833_v5  ;;  %v869_v30 = vrot.slane %v1244_v7, %v868_v46  ;;  %v2174_v44 = vld [vmem:[#allocation32_spill] sm:$0xff] }
 0x2d6   : > { %770 = vbcast.lane.b32.xlu1 %v764_v63, 264  ;;  %766 = vbcast.lane.b32.xlu0 %v764_v63, 256 }
 0x2da   : > { %774 = vbcast.lane.b32.xlu1 %v764_v63, 272  ;;  %782 = vbcast.lane.b32.xlu0 %v764_v63, 288 }
 0x2de   : > { %778 = vbcast.lane.b32.xlu1 %v764_v63, 280  ;;  %790 = vbcast.lane.b32.xlu0 %v764_v63, 304 }
 0x2e2   : > { %786 = vbcast.lane.b32.xlu1 %v764_v63, 296  ;;  %801 = vbcast.lane.b32.xlu0 %v799_v25, 256 }
 0x2e6   : > { %794 = vbcast.lane.b32.xlu1 %v764_v63, 312  ;;  %809 = vbcast.lane.b32.xlu0 %v799_v25, 272  ;;  %v2175_v63 = vld [vmem:[#allocation13_spill] sm:$0xff] }
 0x2ea   : > { %805 = vbcast.lane.b32.xlu1 %v799_v25, 264  ;;  %817 = vbcast.lane.b32.xlu0 %v799_v25, 288 }
 0x2ee   : > { %813 = vbcast.lane.b32.xlu1 %v799_v25, 280  ;;  %825 = vbcast.lane.b32.xlu0 %v799_v25, 304 }
 0x2f2   : > { %821 = vbcast.lane.b32.xlu1 %v799_v25, 296  ;;  %836 = vbcast.lane.b32.xlu0 %v834_v13, 256 }
 0x2f6   : > { %829 = vbcast.lane.b32.xlu1 %v799_v25, 312  ;;  %844 = vbcast.lane.b32.xlu0 %v834_v13, 272  ;;  %v2176_v25 = vld [vmem:[#allocation14_spill] sm:$0xff] }
 0x2fa   : > { %840 = vbcast.lane.b32.xlu1 %v834_v13, 264  ;;  %852 = vbcast.lane.b32.xlu0 %v834_v13, 288 }
 0x2fe   : > { %848 = vbcast.lane.b32.xlu1 %v834_v13, 280  ;;  %860 = vbcast.lane.b32.xlu0 %v834_v13, 304 }
 0x302   : > { %856 = vbcast.lane.b32.xlu1 %v834_v13, 296  ;;  %871 = vbcast.lane.b32.xlu0 %v869_v30, 256 }
 0x306   : > { %864 = vbcast.lane.b32.xlu1 %v834_v13, 312  ;;  %879 = vbcast.lane.b32.xlu0 %v869_v30, 272 }
 0x30a   : > { %875 = vbcast.lane.b32.xlu1 %v869_v30, 264  ;;  %887 = vbcast.lane.b32.xlu0 %v869_v30, 288 }
 0x30e   : > { %883 = vbcast.lane.b32.xlu1 %v869_v30, 280  ;;  %895 = vbcast.lane.b32.xlu0 %v869_v30, 304 }
 0x312   : > { %891 = vbcast.lane.b32.xlu1 %v869_v30, 296 }
 0x316   : > { %899 = vbcast.lane.b32.xlu1 %v869_v30, 312  ;;  %v2177_v30 = vld [vmem:[#allocation43_spill] sm:$0xff] }
 0x348   : > { %v771_v32 = vpop.permute.xlu1 %770  ;;  %v767_v62 = vpop.permute.xlu0 %766 }
 0x349   : > { %v903_v23 = vmul.f32 %v771_v32, %v1511_v8  ;;  %v904_v47 = vmul.f32 %v771_v32, %v1514_v9  ;;  %v901_v34 = vmul.f32 %v767_v62, %v1495_v2  ;;  %v902_v33 = vmul.f32 %v767_v62, %v1500_v4  ;;  %v2178_v62 = vld [vmem:[#allocation44_spill] sm:$0xff] }
 0x34b   : > { %967 = vst [vmem:[%s1887_s6 + $0x10] sm:$0xff] %v903_v23  ;;  %968 = vst [vmem:[%s1887_s6 + $0x18] sm:$0xff] %v904_v47  ;;  %v2179_v47 = vld [vmem:[#allocation19_spill] sm:$0xff] }
 0x34c   : > { %965 = vst [vmem:[%s1887_s6] sm:$0xff] %v901_v34  ;;  %966 = vst [vmem:[%s1887_s6 + $0x8] sm:$0xff] %v902_v33  ;;  %v775_v8 = vpop.permute.xlu1 %774  ;;  %v783_v2 = vpop.permute.xlu0 %782  ;;  %v2180_v33 = vld [vmem:[#allocation20_spill] sm:$0xff] }
 0x34d   : > { %v905_v4 = vmul.f32 %v775_v8, %v1527_v14  ;;  %v906_v9 = vmul.f32 %v775_v8, %v1530_v15  ;;  %v909_v20 = vmul.f32 %v783_v2, %v1585_v36  ;;  %v910_v38 = vmul.f32 %v783_v2, %v1588_v37 }
 0x34f   : > { %969 = vst [vmem:[%s1887_s6 + $0x20] sm:$0xff] %v905_v4  ;;  %970 = vst [vmem:[%s1887_s6 + $0x28] sm:$0xff] %v906_v9  ;;  %v2181_v9 = vld [vmem:[#allocation11_spill] sm:$0xff] }
 0x350   : > { %973 = vst [vmem:[%s1887_s6 + $0x40] sm:$0xff] %v909_v20  ;;  %974 = vst [vmem:[%s1887_s6 + $0x48] sm:$0xff] %v910_v38  ;;  %v779_v51 = vpop.permute.xlu1 %778  ;;  %v791_v50 = vpop.permute.xlu0 %790  ;;  %v2182_v38 = vld [vmem:[#allocation12_spill] sm:$0xff] }
 0x351   : > { %v907_v35 = vmul.f32 %v779_v51, %v1559_v26  ;;  %v908_v14 = vmul.f32 %v779_v51, %v1562_v27  ;;  %v913_v15 = vmul.f32 %v791_v50, %v1649_v60  ;;  %v914_v36 = vmul.f32 %v791_v50, %v1652_v61  ;;  %v2183_v50 = vld [vmem:[#allocation29_spill] sm:$0xff] }
 0x353   : > { %971 = vst [vmem:[%s1887_s6 + $0x30] sm:$0xff] %v907_v35  ;;  %972 = vst [vmem:[%s1887_s6 + $0x38] sm:$0xff] %v908_v14  ;;  %v2184_v14 = vld [vmem:[#allocation30_spill] sm:$0xff] }
 0x354   : > { %977 = vst [vmem:[%s1887_s6 + $0x60] sm:$0xff] %v913_v15  ;;  %978 = vst [vmem:[%s1887_s6 + $0x68] sm:$0xff] %v914_v36  ;;  %v787_v37 = vpop.permute.xlu1 %786  ;;  %v802_v41 = vpop.permute.xlu0 %801 }
 0x355   : > { %v911_v57 = vmul.f32 %v787_v37, %v1617_v48  ;;  %v912_v26 = vmul.f32 %v787_v37, %v1620_v49  ;;  %v917_v27 = vmul.f32 %v802_v41, %v1489_v0  ;;  %v918_v60 = vmul.f32 %v802_v41, %v1492_v1  ;;  %v2185_v41 = vld [vmem:[#allocation23_spill] sm:$0xff] }
 0x357   : > { %975 = vst [vmem:[%s1887_s6 + $0x50] sm:$0xff] %v911_v57  ;;  %976 = vst [vmem:[%s1887_s6 + $0x58] sm:$0xff] %v912_v26  ;;  %v2186_v26 = vld [vmem:[#allocation24_spill] sm:$0xff] }
 0x358   : > { %981 = vst [vmem:[%s1887_s6 + $0x80] sm:$0xff] %v917_v27  ;;  %982 = vst [vmem:[%s1887_s6 + $0x88] sm:$0xff] %v918_v60  ;;  %v795_v61 = vpop.permute.xlu1 %794  ;;  %v810_v53 = vpop.permute.xlu0 %809  ;;  %v2187_v60 = vld [vmem:[#allocation41_spill] sm:$0xff] }
 0x359   : > { %v915_v18 = vmul.f32 %v795_v61, %v1681_v28  ;;  %v916_v48 = vmul.f32 %v795_v61, %v1684_v29  ;;  %v921_v49 = vmul.f32 %v810_v53, %v1521_v12  ;;  %v922_v0 = vmul.f32 %v810_v53, %v2164_v39  ;;  %v2188_v53 = vld [vmem:[#allocation42_spill] sm:$0xff]  ;;  %v2189_v39 = vld [vmem:[#allocation35_spill] sm:$0xff] }
 0x35b   : > { %979 = vst [vmem:[%s1887_s6 + $0x70] sm:$0xff] %v915_v18  ;;  %980 = vst [vmem:[%s1887_s6 + $0x78] sm:$0xff] %v916_v48 }
 0x35c   : > { %985 = vst [vmem:[%s1887_s6 + $0xa0] sm:$0xff] %v921_v49  ;;  %986 = vst [vmem:[%s1887_s6 + $0xa8] sm:$0xff] %v922_v0  ;;  %v806_v1 = vpop.permute.xlu1 %805  ;;  %v818_v42 = vpop.permute.xlu0 %817 }
 0x35d   : > { %v919_v21 = vmul.f32 %v806_v1, %v2165_v58  ;;  %v920_v28 = vmul.f32 %v806_v1, %v2166_v11  ;;  %v925_v29 = vmul.f32 %v818_v42, %v2167_v31  ;;  %v926_v12 = vmul.f32 %v818_v42, %v2168_v3  ;;  %v2190_v1 = vld [vmem:[#allocation36_spill] sm:$0xff]  ;;  %v2191_v58 = vld [vmem:[#allocation17_spill] sm:$0xff]  ;;  %v2192_v11 = vld [vmem:[#allocation18_spill] sm:$0xff] }
 0x35e   : > { %v2193_v3 = vld [vmem:[#allocation45_spill] sm:$0xff] }
 0x35f   : > { %983 = vst [vmem:[%s1887_s6 + $0x90] sm:$0xff] %v919_v21  ;;  %984 = vst [vmem:[%s1887_s6 + $0x98] sm:$0xff] %v920_v28 }
 0x360   : > { %989 = vst [vmem:[%s1887_s6 + $0xc0] sm:$0xff] %v925_v29  ;;  %990 = vst [vmem:[%s1887_s6 + $0xc8] sm:$0xff] %v926_v12  ;;  %v814_v40 = vpop.permute.xlu1 %813  ;;  %v826_v19 = vpop.permute.xlu0 %825 }
 0x361   : > { %v923_v17 = vmul.f32 %v814_v40, %v2169_v6  ;;  %v924_v55 = vmul.f32 %v814_v40, %v2170_v16  ;;  %v929_v10 = vmul.f32 %v826_v19, %v2171_v59  ;;  %v930_v22 = vmul.f32 %v826_v19, %v2172_v54  ;;  %v2194_v40 = vld [vmem:[#allocation46_spill] sm:$0xff]  ;;  %v2195_v6 = vld [vmem:[#allocation27_spill] sm:$0xff]  ;;  %v2196_v16 = vld [vmem:[#allocation28_spill] sm:$0xff] }
 0x362   : > { %v2197_v54 = vld [vmem:[#allocation21_spill] sm:$0xff] }
 0x363   : > { %987 = vst [vmem:[%s1887_s6 + $0xb0] sm:$0xff] %v923_v17  ;;  %988 = vst [vmem:[%s1887_s6 + $0xb8] sm:$0xff] %v924_v55 }
 0x364   : > { %993 = vst [vmem:[%s1887_s6 + $0xe0] sm:$0xff] %v929_v10  ;;  %994 = vst [vmem:[%s1887_s6 + $0xe8] sm:$0xff] %v930_v22  ;;  %v822_v43 = vpop.permute.xlu1 %821  ;;  %v837_v24 = vpop.permute.xlu0 %836 }
 0x365   : > { %v927_v45 = vmul.f32 %v822_v43, %v2173_v56  ;;  %v928_v7 = vmul.f32 %v822_v43, %v2174_v44  ;;  %v933_v52 = vmul.f32 %v837_v24, %v2175_v63  ;;  %v934_v5 = vmul.f32 %v837_v24, %v2176_v25  ;;  %v2198_v43 = vld [vmem:[#allocation22_spill] sm:$0xff]  ;;  %v2199_v56 = vld [vmem:[#allocation39_spill] sm:$0xff]  ;;  %v2200_v44 = vld [vmem:[#allocation40_spill] sm:$0xff] }
 0x366   : > { %v2201_v25 = vld [vmem:[#allocation33_spill] sm:$0xff] }
 0x367   : > { %991 = vst [vmem:[%s1887_s6 + $0xd0] sm:$0xff] %v927_v45  ;;  %992 = vst [vmem:[%s1887_s6 + $0xd8] sm:$0xff] %v928_v7 }
 0x368   : > { %997 = vst [vmem:[%s1887_s6 + $0x100] sm:$0xff] %v933_v52  ;;  %998 = vst [vmem:[%s1887_s6 + $0x108] sm:$0xff] %v934_v5  ;;  %v830_v13 = vpop.permute.xlu1 %829  ;;  %v845_v46 = vpop.permute.xlu0 %844 }
 0x369   : > { %v931_v32 = vmul.f32 %v830_v13, %v2177_v30  ;;  %v932_v23 = vmul.f32 %v830_v13, %v2178_v62  ;;  %v937_v34 = vmul.f32 %v845_v46, %v2179_v47  ;;  %v938_v8 = vmul.f32 %v845_v46, %v2180_v33  ;;  %v2202_v13 = vld [vmem:[#allocation34_spill] sm:$0xff]  ;;  %v2203_v30 = vld [vmem:[#allocation51_spill] sm:$0xff]  ;;  %v2204_v62 = vld [vmem:[#allocation52_spill] sm:$0xff] }
 0x36b   : > { %995 = vst [vmem:[%s1887_s6 + $0xf0] sm:$0xff] %v931_v32  ;;  %996 = vst [vmem:[%s1887_s6 + $0xf8] sm:$0xff] %v932_v23 }
 0x36c   : > { %1001 = vst [vmem:[%s1887_s6 + $0x120] sm:$0xff] %v937_v34  ;;  %1002 = vst [vmem:[%s1887_s6 + $0x128] sm:$0xff] %v938_v8  ;;  %v841_v2 = vpop.permute.xlu1 %840  ;;  %v853_v4 = vpop.permute.xlu0 %852  ;;  %v2205_v34 = vld [vmem:[#allocation47_spill] sm:$0xff]  ;;  %v2206_v8 = vld [vmem:[#allocation48_spill] sm:$0xff] }
 0x36d   : > { %v935_v20 = vmul.f32 %v841_v2, %v2181_v9  ;;  %v936_v51 = vmul.f32 %v841_v2, %v2182_v38  ;;  %v941_v35 = vmul.f32 %v853_v4, %v2183_v50  ;;  %v942_v15 = vmul.f32 %v853_v4, %v2184_v14  ;;  %v2207_v9 = vld [vmem:[#allocation49_spill] sm:$0xff]  ;;  %v2208_v38 = vld [vmem:[#allocation50_spill] sm:$0xff] }
 0x36f   : > { %999 = vst [vmem:[%s1887_s6 + $0x110] sm:$0xff] %v935_v20  ;;  %1000 = vst [vmem:[%s1887_s6 + $0x118] sm:$0xff] %v936_v51 }
 0x370   : > { %1005 = vst [vmem:[%s1887_s6 + $0x140] sm:$0xff] %v941_v35  ;;  %1006 = vst [vmem:[%s1887_s6 + $0x148] sm:$0xff] %v942_v15  ;;  %v849_v36 = vpop.permute.xlu1 %848  ;;  %v861_v37 = vpop.permute.xlu0 %860 }
 0x371   : > { %v939_v57 = vmul.f32 %v849_v36, %v2185_v41  ;;  %v940_v27 = vmul.f32 %v849_v36, %v2186_v26  ;;  %v945_v61 = vmul.f32 %v861_v37, %v2187_v60  ;;  %v946_v18 = vmul.f32 %v861_v37, %v2188_v53 }
 0x373   : > { %1003 = vst [vmem:[%s1887_s6 + $0x130] sm:$0xff] %v939_v57  ;;  %1004 = vst [vmem:[%s1887_s6 + $0x138] sm:$0xff] %v940_v27 }
 0x374   : > { %1009 = vst [vmem:[%s1887_s6 + $0x160] sm:$0xff] %v945_v61  ;;  %1010 = vst [vmem:[%s1887_s6 + $0x168] sm:$0xff] %v946_v18  ;;  %v857_v48 = vpop.permute.xlu1 %856  ;;  %v872_v49 = vpop.permute.xlu0 %871 }
 0x375   : > { %v943_v0 = vmul.f32 %v857_v48, %v2189_v39  ;;  %v944_v42 = vmul.f32 %v857_v48, %v2190_v1  ;;  %v949_v21 = vmul.f32 %v872_v49, %v2191_v58  ;;  %v950_v28 = vmul.f32 %v872_v49, %v2192_v11 }
 0x377   : > { %1007 = vst [vmem:[%s1887_s6 + $0x150] sm:$0xff] %v943_v0  ;;  %1008 = vst [vmem:[%s1887_s6 + $0x158] sm:$0xff] %v944_v42 }
 0x378   : > { %1013 = vst [vmem:[%s1887_s6 + $0x180] sm:$0xff] %v949_v21  ;;  %1014 = vst [vmem:[%s1887_s6 + $0x188] sm:$0xff] %v950_v28  ;;  %v865_v31 = vpop.permute.xlu1 %864  ;;  %v880_v29 = vpop.permute.xlu0 %879 }
 0x379   : > { %v947_v12 = vmul.f32 %v865_v31, %v2193_v3  ;;  %v948_v19 = vmul.f32 %v865_v31, %v2194_v40  ;;  %v953_v17 = vmul.f32 %v880_v29, %v2195_v6  ;;  %v954_v55 = vmul.f32 %v880_v29, %v2196_v16 }
 0x37b   : > { %1011 = vst [vmem:[%s1887_s6 + $0x170] sm:$0xff] %v947_v12  ;;  %1012 = vst [vmem:[%s1887_s6 + $0x178] sm:$0xff] %v948_v19 }
 0x37c   : > { %1017 = vst [vmem:[%s1887_s6 + $0x1a0] sm:$0xff] %v953_v17  ;;  %1018 = vst [vmem:[%s1887_s6 + $0x1a8] sm:$0xff] %v954_v55  ;;  %v876_v59 = vpop.permute.xlu1 %875  ;;  %v888_v10 = vpop.permute.xlu0 %887 }
 0x37d   : > { %v951_v22 = vmul.f32 %v876_v59, %v2197_v54  ;;  %v952_v24 = vmul.f32 %v876_v59, %v2198_v43  ;;  %v957_v45 = vmul.f32 %v888_v10, %v2199_v56  ;;  %v958_v7 = vmul.f32 %v888_v10, %v2200_v44 }
 0x37f   : > { %1015 = vst [vmem:[%s1887_s6 + $0x190] sm:$0xff] %v951_v22  ;;  %1016 = vst [vmem:[%s1887_s6 + $0x198] sm:$0xff] %v952_v24 }
 0x380   : > { %1021 = vst [vmem:[%s1887_s6 + $0x1c0] sm:$0xff] %v957_v45  ;;  %1022 = vst [vmem:[%s1887_s6 + $0x1c8] sm:$0xff] %v958_v7  ;;  %v884_v63 = vpop.permute.xlu1 %883  ;;  %v896_v52 = vpop.permute.xlu0 %895 }
 0x381   : > { %v955_v5 = vmul.f32 %v884_v63, %v2201_v25  ;;  %v956_v46 = vmul.f32 %v884_v63, %v2202_v13  ;;  %v961_v32 = vmul.f32 %v896_v52, %v2203_v30  ;;  %v962_v23 = vmul.f32 %v896_v52, %v2204_v62 }
 0x383   : > { %1019 = vst [vmem:[%s1887_s6 + $0x1b0] sm:$0xff] %v955_v5  ;;  %1020 = vst [vmem:[%s1887_s6 + $0x1b8] sm:$0xff] %v956_v46 }
 0x384   : > { %1025 = vst [vmem:[%s1887_s6 + $0x1e0] sm:$0xff] %v961_v32  ;;  %1026 = vst [vmem:[%s1887_s6 + $0x1e8] sm:$0xff] %v962_v23  ;;  %v892_v47 = vpop.permute.xlu1 %891 }
 0x385   : > { %v959_v33 = vmul.f32 %v892_v47, %v2205_v34  ;;  %v960_v2 = vmul.f32 %v892_v47, %v2206_v8 }
 0x387   : > { %1023 = vst [vmem:[%s1887_s6 + $0x1d0] sm:$0xff] %v959_v33  ;;  %1024 = vst [vmem:[%s1887_s6 + $0x1d8] sm:$0xff] %v960_v2 }
 0x388   : > { %v900_v4 = vpop.permute.xlu1 %899 }
 0x389   : > { %v963_v20 = vmul.f32 %v900_v4, %v2207_v9  ;;  %v964_v51 = vmul.f32 %v900_v4, %v2208_v38 }
 0x38b   : > { %1027 = vst [vmem:[%s1887_s6 + $0x1f0] sm:$0xff] %v963_v20  ;;  %1028 = vst [vmem:[%s1887_s6 + $0x1f8] sm:$0xff] %v964_v51 }
 0x38c   : > { %1288 = shalt.err (!%p1285_p2)
}
 0x38d   : > { %s1289_s28 = scalar_lea.hbm %s2014_s19, 8192  ;;  %s1293_s10 = scalar_lea.hbm %s2067_s3, 16384 }
 0x38e   : > { %p1290_p4 = scmp.ne.s32.totalorder %s2014_s19, %s1289_s28  ;;  %p1294_p9 = scmp.lt.u32.totalorder %s2014_s19, %s2067_s3 }
 0x38f   : > { %p1295_p1 = scmp.lt.u32.totalorder %s1293_s10, %s1289_s28  ;;  %p1297_p6 = scmp.lt.u32.totalorder %s1289_s28, %s2014_s19 }
 0x390   : > { %p1291_p5 = pnand %p1290_p4, %p2209_p11 }
 0x391   : > { %p1296_p3 = por %p1295_p1, %p1294_p9 }
 0x392   : > { %p1292_p7 = pneg %p1291_p5 }
 0x393   : > { %p1298_p12 = por %p1297_p6, %p1296_p3 }
 0x395   : > { %p1299_p13 = pnand %p1298_p12, %p1292_p7 }
 0x397   : > { %1302 = shalt.err (!%p1299_p13)
}
 0x398   : > { %s1350_s4 = smov 256   ;;  %s1351_s6 = smov 16  }
 0x399   : > { %1190 = dma.vmem_to_hbm [thread:$0]  (%p2209_p11), %s2016_s7, 8192, %s2014_s19, %s1030_s16, %s1350_s4, %s1350_s4, %s1351_s6  }
 0x39a PF: > { %s1059_s9 = sand.u32 1, %s1329_s12   ;;  %p2210_p8 = scmp.ne.s32.totalorder %s2117_s25, 0 }
 0x39b   : > { %p2211_p10 = scmp.ge.s32.totalorder %s1341_s15, 2  ;;  %s1060_s8 = scalar_lea.sflag [#allocation4], %s1059_s9 }
 0x39d   : > { %p1197_p0 = pnand %p2211_p10, %p2210_p8 }
 0x39f   : > { %1324 = dma.done.wait (!%p1197_p0), %s1060_s8, 8192  }
 0x3a0   : > { %1326 = vsyncadd (!%p1197_p0), %s1060_s8, 4294959104  ;;  %p16_p2 = scmp.ge.s32.totalorder %s1397_s18, 4   ;;  %s2212_s12 = smov %s1333_s13 }
 0x3a1   : > { %s2213_s13 = smov %s1337_s14  ;;  %s2214_s14 = smov %s1409_s21 }
 0x3a2   : > { %s2215_s15 = smov %s1397_s18  ;;  %18 = sbr.rel (!%p16_p2) target bundleno = 5 (0x5), region = 77 }
 0x3a9   :  { %1065 = vsyncpa [#allocation3], 1 }
 0x3aa   :  { %1067 = vsyncpa [#allocation3 + $0x1], 1 }
 0x3ab   :  { %1068 = vsyncpa [#allocation4], 1 }
 0x3ac   :  { %1070 = vsyncpa [#allocation4 + $0x1], 1 }

</bundles_post_ra>
